<compile_context>
chip_gen: v6e
topology: v6e:2x2x1
jax: 0.10.0
libtpu: 0.0.40
codegen_flags: <defaults>
</compile_context>

<pallas_src>
import functools

import jax
import jax.numpy as jnp
from jax.experimental import pallas as pl
from jax.experimental.pallas import tpu as pltpu

LANES = 128
SUBLANES = 8
NUM_CORES = 2  # megacore split for v7x; just a serial outer axis on 1-TC chips


def _charbonnier_kernel(x_ref, y_ref, out_ref, *, eps2, rows, block_rows,
                        blocks_per_core):
    c = pl.program_id(0)          # core / parallel axis
    i = pl.program_id(1)          # streaming reduction axis (arbitrary)

    @pl.when(i == 0)
    def _():
        out_ref[...] = jnp.zeros_like(out_ref)

    x = x_ref[...].astype(jnp.float32)
    y = y_ref[...].astype(jnp.float32)
    diff = x - y
    val = jnp.sqrt(diff * diff + jnp.float32(eps2))

    # Mask rows past the end of the (padded) array: block overhang and the
    # possible fully-out-of-range duplicate block on the last core.  Uses
    # select (not multiply) so undefined/garbage data cannot poison the sum.
    block_id = c * blocks_per_core + i
    row_ids = jax.lax.broadcasted_iota(jnp.int32, (block_rows, LANES), 0)
    global_row = block_id * block_rows + row_ids
    val = jnp.where(global_row < rows, val, 0.0)

    # (8,128) vreg-shaped partial sums: pure VPU adds, no cross-lane work.
    out_ref[...] += val.reshape(-1, SUBLANES, LANES).sum(axis=0)


def charbonnier_loss(x, y, eps=1e-3, block_rows=2048):
    assert x.shape == y.shape
    n = x.size
    eps2 = float(eps) * float(eps)

    min_tile = SUBLANES * LANES          # 1024 elements
    n_pad = pl.cdiv(n, min_tile) * min_tile
    pad = n_pad - n

    xf = x.reshape(-1)                   # native dtype, no upcast
    yf = y.reshape(-1)
    if pad:
        xf = jnp.pad(xf, (0, pad))
        yf = jnp.pad(yf, (0, pad))

    rows = n_pad // LANES                # multiple of 8
    x2 = xf.reshape(rows, LANES)
    y2 = yf.reshape(rows, LANES)

    block_rows = min(int(block_rows), rows)
    block_rows = max(SUBLANES, (block_rows // SUBLANES) * SUBLANES)

    num_blocks = pl.cdiv(rows, block_rows)
    blocks_per_core = pl.cdiv(num_blocks, NUM_CORES)
    grid = (NUM_CORES, blocks_per_core)

    def in_map(c, i):
        b = c * blocks_per_core + i
        # Clamp keeps the DMA in-bounds when num_blocks is odd / tiny; the
        # duplicate block is fully masked in-kernel via global_row >= rows.
        return (jnp.minimum(b, num_blocks - 1), 0)

    in_spec = pl.BlockSpec((block_rows, LANES), in_map)
    out_spec = pl.BlockSpec((SUBLANES, LANES), lambda c, i: (c, 0))

    partial = pl.pallas_call(
        functools.partial(_charbonnier_kernel, eps2=eps2, rows=rows,
                          block_rows=block_rows,
                          blocks_per_core=blocks_per_core),
        out_shape=jax.ShapeDtypeStruct((NUM_CORES * SUBLANES, LANES),
                                       jnp.float32),
        grid_spec=pltpu.PrefetchScalarGridSpec(
            num_scalar_prefetch=0,
            grid=grid,
            in_specs=[in_spec, in_spec],
            out_specs=out_spec,
        ),
        compiler_params=pltpu.CompilerParams(
            dimension_semantics=("parallel", "arbitrary")),
    )(x2, y2)

    total = jnp.sum(partial)
    if pad:
        # Each zero-padded element contributed exactly sqrt(eps^2) (in f32).
        total = total - jnp.float32(pad) * jnp.sqrt(jnp.float32(eps2))
    return (total / jnp.float32(n)).astype(jnp.float32)


def charbonnier_loss_ref(x, y, eps=1e-3):
    diff = x.astype(jnp.float32) - y.astype(jnp.float32)
    return jnp.mean(jnp.sqrt(diff * diff + eps * eps))


if __name__ == "__main__":
    key = jax.random.PRNGKey(0)
    kx, ky = jax.random.split(key)
    # NCHW, small shapes consistent with the module
    x = jax.random.normal(kx, (2, 4, 16, 16), dtype=jnp.float32)
    y = jax.random.normal(ky, (2, 4, 16, 16), dtype=jnp.float32)

    out = charbonnier_loss(x, y)
    out = jax.block_until_ready(out)

    ref = charbonnier_loss_ref(x, y)
    assert jnp.allclose(out, ref, rtol=1e-5, atol=1e-6), (out, ref)
    print("KERNEL_OK")
</pallas_src>

<mosaic_0001>
module attributes {stable_mosaic.version = 11 : i64} {
  func.func @_charbonnier_kernel(%arg0: i32, %arg1: i32, %arg2: memref<16x128xf32, #tpu.memory_space<vmem>>, %arg3: memref<16x128xf32, #tpu.memory_space<vmem>>, %arg4: memref<8x128xf32, #tpu.memory_space<vmem>>) attributes {dimension_semantics = [#tpu.dimension_semantics<parallel>, #tpu.dimension_semantics<arbitrary>], iteration_bounds = array<i64: 2, 1>, scalar_prefetch = 0 : i64, scratch_operands = 0 : i64, tpu.core_type = #tpu.core_type<tc>, window_params = [{transform_indices = @transform_0, window_bounds = array<i64: 16, 128>}, {transform_indices = @transform_1, window_bounds = array<i64: 16, 128>}, {transform_indices = @transform_2, window_bounds = array<i64: 8, 128>}]} {
    %c0_i32 = arith.constant 0 : i32
    %0 = arith.cmpi eq, %arg1, %c0_i32 : i32
    %1 = arith.extui %0 : i1 to i32
    %c0_i32_0 = arith.constant 0 : i32
    %2 = arith.cmpi ne, %1, %c0_i32_0 : i32
    scf.if %2 {
      %cst_11 = arith.constant 0.000000e+00 : f32
      %25 = vector.broadcast %cst_11 : f32 to vector<8x128xf32>
      %c0_12 = arith.constant 0 : index
      %c0_13 = arith.constant 0 : index
      %26 = vector.load %arg4[%c0_12, %c0_13] : memref<8x128xf32, #tpu.memory_space<vmem>>, vector<8x128xf32>
      tpu.vector_store %arg4[%c0_12, %c0_13], %25 {strides = array<i32>} : memref<8x128xf32, #tpu.memory_space<vmem>>, vector<8x128xf32>,
    } else {
    }
    %c0 = arith.constant 0 : index
    %c0_1 = arith.constant 0 : index
    %3 = vector.load %arg2[%c0, %c0_1] : memref<16x128xf32, #tpu.memory_space<vmem>>, vector<16x128xf32>
    %c0_2 = arith.constant 0 : index
    %c0_3 = arith.constant 0 : index
    %4 = vector.load %arg3[%c0_2, %c0_3] : memref<16x128xf32, #tpu.memory_space<vmem>>, vector<16x128xf32>
    %5 = arith.subf %3, %4 : vector<16x128xf32>
    %6 = arith.mulf %5, %5 : vector<16x128xf32>
    %cst = arith.constant 9.99999997E-7 : f32
    %7 = vector.broadcast %cst : f32 to vector<16x128xf32>
    %8 = arith.addf %6, %7 : vector<16x128xf32>
    %9 = math.sqrt %8 : vector<16x128xf32>
    %c1_i32 = arith.constant 1 : i32
    %10 = arith.muli %arg0, %c1_i32 : i32
    %11 = arith.addi %10, %arg1 : i32
    %12 = tpu.iota {dimensions = array<i32: 0>} : vector<16x128xi32>
    %c16_i32 = arith.constant 16 : i32
    %13 = arith.muli %11, %c16_i32 : i32
    %14 = vector.broadcast %13 : i32 to vector<16x128xi32>
    %15 = arith.addi %14, %12 : vector<16x128xi32>
    %c16_i32_4 = arith.constant 16 : i32
    %16 = vector.broadcast %c16_i32_4 : i32 to vector<16x128xi32>
    %17 = arith.cmpi slt, %15, %16 : vector<16x128xi32>
    %cst_5 = arith.constant 0.000000e+00 : f32
    %18 = vector.broadcast %cst_5 : f32 to vector<16x128xf32>
    %19 = arith.select %17, %9, %18 : vector<16x128xi1>, vector<16x128xf32>
    %c0_6 = arith.constant 0 : index
    %c0_7 = arith.constant 0 : index
    %20 = vector.load %arg4[%c0_6, %c0_7] : memref<8x128xf32, #tpu.memory_space<vmem>>, vector<8x128xf32>
    %21 = vector.shape_cast %19 : vector<16x128xf32> to vector<2x8x128xf32>
    %cst_8 = arith.constant dense<0.000000e+00> : vector<8x128xf32>
    %22 = vector.multi_reduction <add>, %21, %cst_8 [0] : vector<2x8x128xf32> to vector<8x128xf32>
    %23 = arith.addf %20, %22 : vector<8x128xf32>
    %c0_9 = arith.constant 0 : index
    %c0_10 = arith.constant 0 : index
    %24 = vector.load %arg4[%c0_9, %c0_10] : memref<8x128xf32, #tpu.memory_space<vmem>>, vector<8x128xf32>
    tpu.vector_store %arg4[%c0_9, %c0_10], %23 {strides = array<i32>} : memref<8x128xf32, #tpu.memory_space<vmem>>, vector<8x128xf32>,
    return
  }
  func.func @transform_0(%arg0: i32, %arg1: i32) -> (i32, i32) {
    %c1_i32 = arith.constant 1 : i32
    %0 = arith.muli %arg0, %c1_i32 : i32
    %1 = arith.addi %0, %arg1 : i32
    %c0_i32 = arith.constant 0 : i32
    %2 = arith.minsi %1, %c0_i32 : i32
    %c0_i32_0 = arith.constant 0 : i32
    %c0_i32_1 = arith.constant 0 : i32
    return %2, %c0_i32_0 : i32, i32
  }
  func.func @transform_1(%arg0: i32, %arg1: i32) -> (i32, i32) {
    %c1_i32 = arith.constant 1 : i32
    %0 = arith.muli %arg0, %c1_i32 : i32
    %1 = arith.addi %0, %arg1 : i32
    %c0_i32 = arith.constant 0 : i32
    %2 = arith.minsi %1, %c0_i32 : i32
    %c0_i32_0 = arith.constant 0 : i32
    %c0_i32_1 = arith.constant 0 : i32
    return %2, %c0_i32_0 : i32, i32
  }
  func.func @transform_2(%arg0: i32, %arg1: i32) -> (i32, i32) {
    %c0_i32 = arith.constant 0 : i32
    %c0_i32_0 = arith.constant 0 : i32
    return %arg0, %c0_i32 : i32, i32
  }
}

</mosaic_0001>

<bundles_post_ra>
// kernel: tpu_custom_call.1
= control target key start
LH: loop header
LB: loop body
LE: loop exit
PB: predicated region body
PF: predicated region fallthrough
CT: control target
= control target key end

     0   :  { %7 = vsyncpa [#allocation3], 0  ;;  %s881_s0 = inlined_call_operand.hbm [shape: f32[16,128], index: 0, kind: input, shape index: {}]   ;;  %s882_s1 = inlined_call_operand.hbm [shape: f32[16,128], index: 1, kind: input, shape index: {}]   ;;  %s883_s2 = inlined_call_operand.hbm [shape: f32[16,128], index: 2, kind: output, shape index: {}]  }
   0x1   :  { %9 = vsyncpa [#allocation3 + $0x1], 0 }
   0x2   :  { %10 = vsyncpa [#allocation6], 0 }
   0x3   :  { %12 = vsyncpa [#allocation6 + $0x1], 0 }
   0x4   :  { %13 = vsyncpa [#allocation4], 0 }
   0x5   :  { %15 = vsyncpa [#allocation4 + $0x1], 0  ;;  %s702_s9 = smov 0   ;;  %s704_s10 = smov 0  }
   0x6   :  { %s706_s11 = smov 0   ;;  %s708_s12 = smov 0  }
   0x7   :  { %s710_s13 = smov 0   ;;  %s712_s14 = smov 0  }
   0x8   :  { %s714_s15 = smov 0   ;;  %s716_s16 = smov 0  }
   0x9 LB: > { %s400_s17 = sadd.s32 4294967295, %s680_s16   ;;  %s401_s18 = sadd.s32 4294967294, %s680_s16   ;;  %s680_s16 = sphi %s716_s16, %s21_s16   ;;  %s676_s15 = sphi %s714_s15, %s902_s15   ;;  %s672_s14 = sphi %s712_s14, %s901_s14   ;;  %s668_s13 = sphi %s710_s13, %s871_s13   ;;  %s664_s12 = sphi %s708_s12, %s900_s12   ;;  %s660_s11 = sphi %s706_s11, %s899_s11   ;;  %s656_s10 = sphi %s704_s10, %s898_s10   ;;  %s652_s9 = sphi %s702_s9, %s897_s9  }
   0xa   : > { %s33_s19 = sadd.s32 1, %s676_s15  ;;  %p649_p1 = scmp.ne.s32.totalorder %s668_s13, 0 }
   0xb   : > { %p35_p0 = scmp.ge.s32.totalorder %s33_s19, 2  ;;  %p54_p2 = scmp.eq.s32.totalorder %s680_s16, 0 }
   0xc   : > { %p59_p3 = scmp.ne.s32.totalorder %s668_s13, %s664_s12  ;;  %p60_p5 = scmp.eq.s32.totalorder %s400_s17, 0 }
   0xd   : > { %s904_s19 = smov (%p35_p0, %s33_s19), 0  ;;  %p748_p4 = por %p649_p1, %p54_p2 }
   0xe   : > { %p752_p6 = por %p60_p5, %p59_p3  ;;  %s101_s22 = ssub.s32 %s676_s15, %s904_s19 }
   0xf   : > { %p102_p7 = scmp.eq.s32.totalorder %s101_s22, 0  ;;  %s104_s23 = sadd.s32 1, %s660_s11 }
  0x10   : > { %s887_s21 = scalar_select %p752_p6, 1, 0 }
  0x11   : > { %s760_s24 = scalar_select %p102_p7, %s660_s11, %s104_s23  }
  0x12   : > { %p114_p8 = scmp.ne.s32.totalorder %s660_s11, %s656_s10  ;;  %p115_p9 = scmp.eq.s32.totalorder %s400_s17, 1 }
  0x13   : > { %p120_p10 = scmp.ne.s32.totalorder %s656_s10, %s652_s9  ;;  %p121_p11 = scmp.eq.s32.totalorder %s401_s18, 1 }
  0x14   : > { %p766_p12 = por %p115_p9, %p114_p8  ;;  %p438_p1 = scmp.lt.s32.totalorder %s680_s16, 2 }
  0x15   : > { %p771_p0 = por %p121_p11, %p120_p10  ;;  %s682_s27 = smov [#allocation2]  }
  0x16   : > { %s888_s25 = scalar_select %p766_p12, 1, 0 }
  0x17   : > { %s889_s26 = scalar_select %p771_p0, 1, 0 }
  0x18   : > { %s155_s28 = sshll.u32 %s682_s27, 4  ;;  %p778_p2 = pnand %p438_p1, %p748_p4  ;;  %s156_s28 = int_to_ptr.vmem [resolvable:$true] %s155_s28 }
  0x19   : > { %s519_s4 = scalar_lea.hbm %s881_s0, 256 }
  0x1a   : > { %p520_p3 = scmp.ne.s32.totalorder %s881_s0, %s519_s4  ;;  %p521_p5 = pneg %p778_p2 }
  0x1b   : > { %p526_p8 = scmp.lt.s32.totalorder %s519_s4, %s519_s4 }
  0x1c   : > { %p522_p7 = pnand %p521_p5, %p520_p3 }
  0x1e   : > { %p523_p4 = pneg %p522_p7 }
  0x20   : > { %p528_p9 = pnand %p526_p8, %p523_p4 }
  0x22   : > { %531 = shalt.err (!%p528_p9)
}
  0x23   : > { %s532_s7 = scalar_lea.vmem %s156_s28, 256  ;;  %s539_s8 = scalar_lea.vmem %s156_s28, 512 }
  0x24   : > { %p533_p10 = scmp.ne.s32.totalorder %s156_s28, %s532_s7  ;;  %p540_p13 = scmp.lt.s32.totalorder %s156_s28, %s156_s28 }
  0x25   : > { %p541_p0 = scmp.lt.s32.totalorder %s539_s8, %s532_s7 }
  0x26   : > { %p535_p11 = pnand %p533_p10, %p521_p5 }
  0x27   : > { %p542_p12 = por %p541_p0, %p540_p13 }
  0x28   : > { %p536_p1 = pneg %p535_p11 }
  0x2a   : > { %p543_p6 = pnand %p542_p12, %p536_p1 }
  0x2c   : > { %546 = shalt.err (!%p543_p6)
}
  0x2d   : > { %s683_s12 = smov 128   ;;  %s684_s17 = smov 8  }
  0x2e   : > { %430 = dma.hbm_to_vmem [thread:$0]  (!%p778_p2), %s881_s0, 256, %s156_s28, [#allocation3], %s683_s12, %s683_s12, %s684_s17  }
  0x2f   : > { %p410_p3 = scmp.ge.s32.totalorder %s680_s16, 1  ;;  %p187_p7 = scmp.lt.s32.totalorder %s680_s16, 3 }
  0x30   : > { %s685_s23 = smov [#allocation5]   ;;  %s547_s4 = scalar_lea.hbm %s882_s1, 256 }
  0x31   : > { %p803_p4 = pnand %p410_p3, %p187_p7  ;;  %s179_s27 = sshll.u32 %s685_s23, 4  ;;  %s180_s27 = int_to_ptr.vmem [resolvable:$true] %s179_s27 }
  0x32   : > { %p548_p6 = scmp.ne.s32.totalorder %s882_s1, %s547_s4  ;;  %p554_p0 = scmp.lt.s32.totalorder %s547_s4, %s547_s4 }
  0x33   : > { %s891_s22 = scalar_select %p803_p4, 1, 0 }
  0x34   : > { %p550_p12 = pnand %p548_p6, %p521_p5 }
  0x36   : > { %p551_p13 = pneg %p550_p12 }
  0x38   : > { %p556_p8 = pnand %p554_p0, %p551_p13 }
  0x3a   : > { %559 = shalt.err (!%p556_p8)
}
  0x3b   : > { %s560_s28 = scalar_lea.vmem %s180_s27, 256  ;;  %s567_s7 = scalar_lea.vmem %s180_s27, 512 }
  0x3c   : > { %p561_p9 = scmp.ne.s32.totalorder %s180_s27, %s560_s28  ;;  %p568_p1 = scmp.lt.s32.totalorder %s180_s27, %s180_s27 }
  0x3d   : > { %p569_p3 = scmp.lt.s32.totalorder %s567_s7, %s560_s28 }
  0x3e   : > { %p563_p10 = pnand %p561_p9, %p521_p5 }
  0x3f   : > { %p570_p7 = por %p569_p3, %p568_p1 }
  0x40   : > { %p564_p11 = pneg %p563_p10 }
  0x42   : > { %p571_p4 = pnand %p570_p7, %p564_p11 }
  0x44   : > { %574 = shalt.err (!%p571_p4)
}
  0x45   : > { %433 = dma.hbm_to_vmem [thread:$0]  (!%p778_p2), %s882_s1, 256, %s180_s27, [#allocation6], %s683_s12, %s683_s12, %s684_s17  }
  0x46   : > { %p892_p6 = scmp.ne.s32.totalorder %s891_s22, 0 }
  0x47   : > { %s193_s20 = sand.u32 (!%p892_p6), 1, %s668_s13   ;;  %p893_p5 = scmp.ne.s32.totalorder (!%p892_p6), %s887_s21, 0 }
  0x48   : > { %191 = sbr.rel (%p892_p6) target bundleno = 123 (0x7b), region = 28  ;;  %s411_s23 = sshll.u32 (!%p892_p6), %s193_s20, 4 }
  0x49   : > { %s194_s30 = scalar_lea.sflag (!%p892_p6), [#allocation3], %s193_s20  ;;  %s197_s3 = scalar_lea.vmem (!%p892_p6), [#allocation2], %s411_s23 }
  0x4d   : > { %638 = dma.done.wait (%p893_p5), %s194_s30, 256  }
  0x4e   : > { %640 = vsyncadd (%p893_p5), %s194_s30, 4294967040  ;;  %s203_s29 = scalar_lea.sflag [#allocation6], %s193_s20  ;;  %s206_s4 = scalar_lea.vmem [#allocation5], %s411_s23 }
  0x4f   : > { %642 = dma.done.wait (%p893_p5), %s203_s29, 256  }
  0x50   : > { %644 = vsyncadd (%p893_p5), %s203_s29, 4294967040  ;;  %v245_v0 = vld [vmem:[%s197_s3] sm:$0xff]  ;;  %v246_v1 = vld [vmem:[%s197_s3 + $0x8] sm:$0xff]  ;;  %v270_v10 = vlaneseq  ;;  %s414_s12 = sshll.u32 %s672_s14, 4  ;;  %s229_s21 = sand.u32 1, %s656_s10  }
  0x51   : > { %v247_v2 = vld [vmem:[%s206_s4] sm:$0xff]  ;;  %v248_v3 = vld [vmem:[%s206_s4 + $0x8] sm:$0xff]  ;;  %v274_v13 = vstv %s414_s12  ;;  %s413_s17 = sshll.u32 %s229_s21, 3  ;;  %s416_s22 = sshll.u32 %s672_s14, 7 }
  0x52   : > { %v249_v4 = vsub.f32 %v245_v0, %v247_v2  ;;  %v250_v5 = vsub.f32 %v246_v1, %v248_v3  ;;  %v271_v11 = vshrl.u32 %v270_v10, 7  ;;  %s231_s27 = scalar_lea.vmem [#allocation7], %s413_s17  ;;  %s297_s7 = scalar_lea.hbm %s883_s2, %s416_s22 }
  0x53   : > { %s299_s5 = sshll.u32 %s231_s27, 4  ;;  %s286_s8 = scalar_lea.sflag [#allocation4], %s229_s21  ;;  %s300_s5 = int_to_ptr.vmem [resolvable:$true] %s299_s5 }
  0x54   : > { %v251_v6 = vmul.f32 %v249_v4, %v249_v4  ;;  %v252_v7 = vmul.f32 %v250_v5, %v250_v5  ;;  %v272_v12 = vadd.s32 8, %v271_v11  ;;  %v275_v14 = vadd.s32 %v274_v13, %v271_v11  ;;  %s575_s18 = scalar_lea.vmem %s300_s5, 128  ;;  %p894_p4 = scmp.ne.s32.totalorder %s888_s25, 0 }
  0x55   : > { %p576_p2 = scmp.ne.s32.totalorder %s300_s5, %s575_s18  ;;  %s686_s20 = smov [#allocation7]  }
  0x56   : > { %v253_v8 = vadd.f32 1e-06, %v251_v6  ;;  %v254_v9 = vadd.f32 1e-06, %v252_v7  ;;  %v276_v15 = vadd.s32 %v274_v13, %v272_v12  ;;  %vm277_vm4 = vcmp.lt.s32.totalorder %v275_v14, 16  ;;  %s579_s23 = sshll.u32 %s686_s20, 4  ;;  %s580_s23 = int_to_ptr.vmem [resolvable:$false] %s579_s23 }
  0x57   : > { %p577_p12 = pnand %p576_p2, %p894_p4  ;;  %s581_s30 = scalar_lea.vmem %s580_s23, 256 }
  0x58   : > { %515 = vrsqrt.f32 %v253_v8  ;;  %vm257_vm0 = vcmp.eq.f32.partialorder %v253_v8, inf  ;;  %v260_v17 = vand.u32 2147483648, %v253_v8  ;;  %vm259_vm1 = vcmp.eq.f32.partialorder %v253_v8, 0.0  ;;  %p582_p0 = scmp.lt.s32.totalorder %s300_s5, %s580_s23  ;;  %p583_p8 = scmp.lt.s32.totalorder %s581_s30, %s575_s18 }
  0x59   : > { %517 = vrsqrt.f32 %v254_v9  ;;  %vm264_vm2 = vcmp.eq.f32.partialorder %v254_v9, inf  ;;  %v267_v20 = vand.u32 2147483648, %v254_v9  ;;  %vm266_vm3 = vcmp.eq.f32.partialorder %v254_v9, 0.0  ;;  %p578_p13 = pneg %p577_p12 }
  0x5a   : > { %vm278_vm5 = vcmp.lt.s32.totalorder %v276_v15, 16  ;;  %p584_p9 = por %p583_p8, %p582_p0 }
  0x5c   : > { %p585_p10 = pnand %p584_p9, %p578_p13 }
  0x65   : > { %v516_v16 = vpop.eup %515 }
  0x66   : > { %v518_v18 = vpop.eup %517  ;;  %v256_v19 = vmul.f32 %v516_v16, %v253_v8 }
  0x67   : > { %v263_v21 = vmul.f32 %v518_v18, %v254_v9 }
  0x68   : > { %v258_v22 = vsel %vm257_vm0, %v253_v8, %v256_v19 }
  0x69   : > { %v261_v23 = vsel %vm259_vm1, %v260_v17, %v258_v22  ;;  %v265_v24 = vsel %vm264_vm2, %v254_v9, %v263_v21 }
  0x6a   : > { %v268_v25 = vsel %vm266_vm3, %v267_v20, %v265_v24  ;;  %v279_v26 = vsel %vm277_vm4, %v261_v23, 0.0 }
  0x6b   : > { %v280_v27 = vsel %vm278_vm5, %v268_v25, 0.0 }
  0x6c   : > { %v282_v28 = vadd.f32 %v280_v27, %v279_v26 }
  0x6e   : > { %284 = vst [vmem:[%s231_s27] sm:$0xff] %v282_v28 }
  0x6f   : > { %588 = shalt.err (!%p585_p10)
}
  0x70   : > { %s589_s14 = scalar_lea.hbm %s297_s7, 128  ;;  %s593_s4 = scalar_lea.hbm %s883_s2, 256 }
  0x71   : > { %p590_p11 = scmp.ne.s32.totalorder %s297_s7, %s589_s14  ;;  %p594_p7 = scmp.lt.s32.totalorder %s297_s7, %s883_s2 }
  0x72   : > { %p595_p6 = scmp.lt.s32.totalorder %s593_s4, %s589_s14 }
  0x73   : > { %p591_p1 = pnand %p590_p11, %p894_p4 }
  0x74   : > { %p596_p5 = por %p595_p6, %p594_p7 }
  0x75   : > { %p592_p3 = pneg %p591_p1 }
  0x77   : > { %p597_p2 = pnand %p596_p5, %p592_p3 }
  0x79   : > { %600 = shalt.err (!%p597_p2)
}
  0x7a   : > { %425 = dma.vmem_to_hbm [thread:$0]  (%p894_p4), %s300_s5, 128, %s297_s7, %s286_s8  }
  0x7b PF: > { %s311_s17 = sand.u32 1, %s652_s9   ;;  %p895_p12 = scmp.ne.s32.totalorder %s889_s26, 0 }
  0x7c   : > { %p896_p13 = scmp.ge.s32.totalorder %s680_s16, 2  ;;  %s312_s22 = scalar_lea.sflag [#allocation4], %s311_s17 }
  0x7e   : > { %p435_p0 = pnand %p896_p13, %p895_p12 }
  0x80   : > { %p436_p8 = pneg %p435_p0 }
  0x82   : > { %646 = dma.done.wait (%p436_p8), %s312_s22, 128  }
  0x83   : > { %648 = vsyncadd (%p436_p8), %s312_s22, 4294967168  ;;  %s21_s16 = sadd.s32 1, %s680_s16   ;;  %s897_s9 = smov %s656_s10 }
  0x84   : > { %p18_p9 = scmp.ge.s32.totalorder %s21_s16, 4   ;;  %s898_s10 = smov %s660_s11 }
  0x85   : > { %s899_s11 = smov %s760_s24  ;;  %s900_s12 = smov %s668_s13 }
  0x86   : > { %s871_s13 = smov 0   ;;  %s901_s14 = smov %s676_s15 }
  0x87   : > { %s902_s15 = smov %s904_s19  ;;  %20 = sbr.rel (!%p18_p9) target bundleno = 9 (0x9), region = 90 }
  0x8c   :  { %317 = vsyncpa [#allocation3], 1 }
  0x8d   :  { %319 = vsyncpa [#allocation3 + $0x1], 1 }
  0x8e   :  { %320 = vsyncpa [#allocation6], 1 }
  0x8f   :  { %322 = vsyncpa [#allocation6 + $0x1], 1 }
  0x90   :  { %323 = vsyncpa [#allocation4], 1 }
  0x91   :  { %325 = vsyncpa [#allocation4 + $0x1], 1 }

</bundles_post_ra>
